<compile_context>
chip_gen: v6e
topology: v6e:2x2x1
jax: 0.10.0
libtpu: 0.0.40
codegen_flags: <defaults>
</compile_context>

<pallas_src>
import functools
import math

import jax
import jax.numpy as jnp
from jax import lax
from jax.experimental import pallas as pl
from jax.experimental.pallas import tpu as pltpu


def _round_up(x: int, m: int) -> int:
    return (x + m - 1) // m * m


def _cdiv(a: int, b: int) -> int:
    return (a + b - 1) // b


def _vmem_budget_bytes() -> int:
    """Scoped-VMEM budget derived per TPU generation (v7x: 64 MiB physical)."""
    try:
        cap = int(pltpu.get_tpu_info().vmem_capacity_bytes)
    except Exception:
        cap = 64 * 1024 * 1024  # conservative fallback == v7x per-core VMEM
    # ~5/8 of physical, capped; leaves room for compiler-internal scratch.
    return min(cap * 5 // 8, 80 * 1024 * 1024)


def _balanced_tile(aligned_dim: int, max_tile: int, granule: int) -> int:
    """Largest tile <= max_tile (multiple of granule) splitting aligned_dim
    into equal-ish blocks (avoids one big block + a mostly-padding block)."""
    t = max(granule, _round_up(min(max_tile, aligned_dim), granule))
    nblk = _cdiv(aligned_dim, t)
    return _round_up(_cdiv(aligned_dim, nblk), granule)


def _vmem_footprint(tm, tn, tk, in_bytes, out_bytes, use_scratch) -> int:
    fp = 2 * (tm * tk + tk * tn) * in_bytes   # double-buffered x & w blocks
    fp += 2 * tm * tn * out_bytes             # double-buffered output block
    fp += 2 * tn * 4                          # bias block (tiny)
    if use_scratch:
        fp += tm * tn * 4                     # resident f32 accumulator
    return fp


def _linear_kernel(x_ref, w_ref, b_ref, o_ref, *scratch, act: bool, precision):
    # f32 outputs accumulate straight into the resident output block (saves
    # tm*tn*4 B of VMEM + one tile copy); otherwise scratch[0] is the f32 acc.
    acc_ref = scratch[0] if scratch else o_ref
    k = pl.program_id(2)

    @pl.when(k == 0)
    def _init():
        acc_ref[...] = jnp.zeros_like(acc_ref)

    # MXU matmul, always f32 accumulation.
    acc_ref[...] += jnp.dot(
        x_ref[...], w_ref[...],
        preferred_element_type=jnp.float32, precision=precision)

    @pl.when(k == pl.num_programs(2) - 1)
    def _finalize():
        y = acc_ref[...] + b_ref[...].astype(jnp.float32)
        if act:
            # nn.GELU() default is the exact (erf) formulation; math stays in
            # f32 (v5e has no bf16 VPU/EUP).
            y = 0.5 * y * (1.0 + lax.erf(y * (1.0 / math.sqrt(2.0))))
        o_ref[...] = y.astype(o_ref.dtype)


def linear_pallas(x, weight_t, bias, *, act: bool = True,
                  tm: int = 512, tn: int = 512, tk: int = 1024,
                  mxu_bf16: bool = False, precision=None):
    """y = GELU(x @ weight_t + bias).

    x: [..., d_in], weight_t: [d_in, d_out], bias: [d_out] -> [..., d_out].
    """
    orig_shape = x.shape
    d_in = orig_shape[-1]
    d_in2, d_out = weight_t.shape
    assert d_in == d_in2, (d_in, d_in2)

    x2 = x.reshape(-1, d_in)
    M = x2.shape[0]
    out_dtype = x.dtype

    fed_dtype = jnp.bfloat16 if (mxu_bf16 and out_dtype == jnp.float32) else x2.dtype
    in_bytes = jnp.dtype(fed_dtype).itemsize
    out_bytes = jnp.dtype(out_dtype).itemsize
    use_scratch = out_dtype != jnp.float32

    # ---------------- tile-size derivation ----------------
    m_gran = max(8, 32 // in_bytes)        # 8 (f32) / 16 (bf16) / 32 (int8/fp8)
    Ma = _round_up(M, m_gran)
    Ka = _round_up(d_in, 128)
    Na = _round_up(d_out, 128)
    k_gran = 256 if Ka >= 256 else 128     # v6e/v7x MXU is 2x256x256
    n_gran = 256 if Na >= 256 else 128

    tm = _balanced_tile(Ma, tm, m_gran)
    tk = _balanced_tile(Ka, tk, k_gran)
    tn = _balanced_tile(Na, tn, n_gran)

    # Shrink (K first, then N, then M) until the double-buffered working set
    # fits the per-generation VMEM budget.  Never triggers at the defaults.
    budget = _vmem_budget_bytes()
    headroom = 12 * 1024 * 1024
    while _vmem_footprint(tm, tn, tk, in_bytes, out_bytes, use_scratch) > budget - headroom:
        if tk > k_gran:
            tk = _round_up(tk // 2, k_gran)
        elif tn > n_gran:
            tn = _round_up(tn // 2, n_gran)
        elif tm > m_gran:
            tm = _round_up(tm // 2, m_gran)
        else:
            break

    Mp = _round_up(Ma, tm)
    Kp = _round_up(Ka, tk)
    Np = _round_up(Na, tn)

    # v7x has 2 TensorCores sharded over the "parallel" axes; for small layers
    # make sure the parallel part of the grid has >= 2 blocks when possible.
    if (Mp // tm) * (Np // tn) == 1:
        if Np >= 2 * 128:
            tn = _round_up(Np // 2, 128)
            Np = _round_up(Np, tn)
        elif Mp >= 2 * m_gran:
            tm = _round_up(Mp // 2, m_gran)
            Mp = _round_up(Mp, tm)

    # ---------------- operand preparation ----------------
    xp = x2.astype(fed_dtype) if x2.dtype != fed_dtype else x2
    wp = weight_t.astype(fed_dtype) if weight_t.dtype != fed_dtype else weight_t
    # Zero padding is neutral for the matmul; padded rows/cols are sliced off.
    # Pads are conditional, so already-aligned (common) shapes copy nothing.
    # TODO(synk): for repeated calls, pre-pad / pre-cast weight_t & bias once
    # outside the hot path so the (d_in, d_out) copy isn't re-materialized.
    if xp.shape != (Mp, Kp):
        xp = jnp.pad(xp, ((0, Mp - M), (0, Kp - d_in)))
    if wp.shape != (Kp, Np):
        wp = jnp.pad(wp, ((0, Kp - d_in), (0, Np - d_out)))
    bp = bias if Np == d_out else jnp.pad(bias, (0, Np - d_out))
    bp = bp.reshape(1, Np)

    grid = (Mp // tm, Np // tn, Kp // tk)
    kernel = functools.partial(_linear_kernel, act=act, precision=precision)
    scratch_shapes = [pltpu.VMEM((tm, tn), jnp.float32)] if use_scratch else []

    cost = pl.CostEstimate(
        flops=2 * Mp * Kp * Np,
        transcendentals=Mp * Np if act else 0,
        bytes_accessed=(Mp * Kp * in_bytes * grid[1]     # x streamed per N block
                        + Kp * Np * in_bytes * grid[0]   # w streamed per M block
                        + Np * 4 + Mp * Np * out_bytes))

    out_padded = pl.pallas_call(
        kernel,
        out_shape=jax.ShapeDtypeStruct((Mp, Np), out_dtype),
        grid=grid,
        in_specs=[
            pl.BlockSpec((tm, tk), lambda i, j, k: (i, k)),
            # NOTE: if profiling ever shows exposed weight DMA, add
            #   pipeline_mode=pl.Buffered(3) to this weight BlockSpec.
            pl.BlockSpec((tk, tn), lambda i, j, k: (k, j)),
            pl.BlockSpec((1, tn), lambda i, j, k: (0, j)),
        ],
        out_specs=pl.BlockSpec((tm, tn), lambda i, j, k: (i, j)),
        scratch_shapes=scratch_shapes,
        compiler_params=pltpu.CompilerParams(
            dimension_semantics=("parallel", "parallel", "arbitrary"),
            vmem_limit_bytes=budget,
        ),
        cost_estimate=cost,
    )(xp, wp, bp)

    out = out_padded[:M, :d_out]
    return out.reshape(*orig_shape[:-1], d_out)


def reference(x, weight_t, bias, act=True):
    y = x @ weight_t + bias
    if act:
        y = 0.5 * y * (1.0 + lax.erf(y / math.sqrt(2.0)))
    return y


if __name__ == "__main__":
    key = jax.random.PRNGKey(0)
    k1, k2, k3 = jax.random.split(key, 3)

    # Small shapes implied by the module: Linear(d_in=32, d_out=64) applied to
    # a [batch=2, seq=8, d_in=32] activation.
    B, S, d_in, d_out = 2, 8, 32, 64
    x = jax.random.normal(k1, (B, S, d_in), dtype=jnp.float32)

    # Deterministic parameter init (PyTorch-style uniform bounds).
    bound = 1.0 / math.sqrt(d_in)
    weight_t = jax.random.uniform(k2, (d_in, d_out), jnp.float32, -bound, bound)
    bias = jax.random.uniform(k3, (d_out,), jnp.float32, -bound, bound)

    out = jax.block_until_ready(linear_pallas(x, weight_t, bias, act=True))
    ref = reference(x, weight_t, bias, act=True)
    assert out.shape == (B, S, d_out)
    assert jnp.allclose(out, ref, atol=1e-5, rtol=1e-5), \
        float(jnp.max(jnp.abs(out - ref)))

    # act=False branch of the module.
    out_na = jax.block_until_ready(linear_pallas(x, weight_t, bias, act=False))
    assert jnp.allclose(out_na, reference(x, weight_t, bias, act=False),
                        atol=1e-5, rtol=1e-5)

    # bf16-fed MXU fast path (f32 accumulation + f32 bias/GELU epilogue).
    out_bf = jax.block_until_ready(
        linear_pallas(x, weight_t, bias, act=True, mxu_bf16=True))
    assert jnp.allclose(out_bf, ref, atol=2e-2, rtol=2e-2)

    print("KERNEL_OK")
</pallas_src>

<mosaic_0001>
module attributes {stable_mosaic.version = 11 : i64} {
  func.func @_linear_kernel(%arg0: i32, %arg1: i32, %arg2: i32, %arg3: memref<8x128xf32, #tpu.memory_space<vmem>>, %arg4: memref<128x128xf32, #tpu.memory_space<vmem>>, %arg5: memref<1x128xf32, #tpu.memory_space<vmem>>, %arg6: memref<8x128xf32, #tpu.memory_space<vmem>>) attributes {dimension_semantics = [#tpu.dimension_semantics<parallel>, #tpu.dimension_semantics<parallel>, #tpu.dimension_semantics<arbitrary>], iteration_bounds = array<i64: 2, 1, 1>, scalar_prefetch = 0 : i64, scratch_operands = 0 : i64, tpu.core_type = #tpu.core_type<tc>, window_params = [{transform_indices = @transform_0, window_bounds = array<i64: 8, 128>}, {transform_indices = @transform_1, window_bounds = array<i64: 128, 128>}, {transform_indices = @transform_2, window_bounds = array<i64: 1, 128>}, {transform_indices = @transform_3, window_bounds = array<i64: 8, 128>}]} {
    %c0_i32 = arith.constant 0 : i32
    %0 = arith.cmpi eq, %arg2, %c0_i32 : i32
    %1 = arith.extui %0 : i1 to i32
    %c0_i32_0 = arith.constant 0 : i32
    %2 = arith.cmpi ne, %1, %c0_i32_0 : i32
    scf.if %2 {
      %cst_10 = arith.constant 0.000000e+00 : f32
      %12 = vector.broadcast %cst_10 : f32 to vector<8x128xf32>
      %c0_11 = arith.constant 0 : index
      %c0_12 = arith.constant 0 : index
      %13 = vector.load %arg6[%c0_11, %c0_12] : memref<8x128xf32, #tpu.memory_space<vmem>>, vector<8x128xf32>
      tpu.vector_store %arg6[%c0_11, %c0_12], %12 {strides = array<i32>} : memref<8x128xf32, #tpu.memory_space<vmem>>, vector<8x128xf32>,
    } else {
    }
    %c0 = arith.constant 0 : index
    %c0_1 = arith.constant 0 : index
    %3 = vector.load %arg6[%c0, %c0_1] : memref<8x128xf32, #tpu.memory_space<vmem>>, vector<8x128xf32>
    %c0_2 = arith.constant 0 : index
    %c0_3 = arith.constant 0 : index
    %4 = vector.load %arg3[%c0_2, %c0_3] : memref<8x128xf32, #tpu.memory_space<vmem>>, vector<8x128xf32>
    %c0_4 = arith.constant 0 : index
    %c0_5 = arith.constant 0 : index
    %5 = vector.load %arg4[%c0_4, %c0_5] : memref<128x128xf32, #tpu.memory_space<vmem>>, vector<128x128xf32>
    %cst = arith.constant dense<0.000000e+00> : vector<8x128xf32>
    %6 = tpu.matmul %4, %5, %cst {dimension_numbers = #tpu.dot_dimension_numbers<[1], [0], [0], [1], [0, 0, 1, 1], [], []>} : vector<8x128xf32>, vector<128x128xf32>, vector<8x128xf32> -> vector<8x128xf32>
    %7 = arith.addf %3, %6 : vector<8x128xf32>
    %c0_6 = arith.constant 0 : index
    %c0_7 = arith.constant 0 : index
    %8 = vector.load %arg6[%c0_6, %c0_7] : memref<8x128xf32, #tpu.memory_space<vmem>>, vector<8x128xf32>
    tpu.vector_store %arg6[%c0_6, %c0_7], %7 {strides = array<i32>} : memref<8x128xf32, #tpu.memory_space<vmem>>, vector<8x128xf32>,
    %c0_i32_8 = arith.constant 0 : i32
    %9 = arith.cmpi eq, %arg2, %c0_i32_8 : i32
    %10 = arith.extui %9 : i1 to i32
    %c0_i32_9 = arith.constant 0 : i32
    %11 = arith.cmpi ne, %10, %c0_i32_9 : i32
    scf.if %11 {
      %c0_10 = arith.constant 0 : index
      %c0_11 = arith.constant 0 : index
      %12 = vector.load %arg6[%c0_10, %c0_11] : memref<8x128xf32, #tpu.memory_space<vmem>>, vector<8x128xf32>
      %c0_12 = arith.constant 0 : index
      %c0_13 = arith.constant 0 : index
      %13 = vector.load %arg5[%c0_12, %c0_13] : memref<1x128xf32, #tpu.memory_space<vmem>>, vector<1x128xf32>
      %14 = vector.broadcast %13 : vector<1x128xf32> to vector<8x128xf32>
      %15 = arith.addf %12, %14 : vector<8x128xf32>
      %cst_14 = arith.constant 5.000000e-01 : f32
      %16 = vector.broadcast %cst_14 : f32 to vector<8x128xf32>
      %17 = arith.mulf %16, %15 : vector<8x128xf32>
      %cst_15 = arith.constant 0.707106769 : f32
      %18 = vector.broadcast %cst_15 : f32 to vector<8x128xf32>
      %19 = arith.mulf %15, %18 : vector<8x128xf32>
      %20 = math.erf %19 : vector<8x128xf32>
      %cst_16 = arith.constant 1.000000e+00 : f32
      %21 = vector.broadcast %cst_16 : f32 to vector<8x128xf32>
      %22 = arith.addf %21, %20 : vector<8x128xf32>
      %23 = arith.mulf %17, %22 : vector<8x128xf32>
      %c0_17 = arith.constant 0 : index
      %c0_18 = arith.constant 0 : index
      %24 = vector.load %arg6[%c0_17, %c0_18] : memref<8x128xf32, #tpu.memory_space<vmem>>, vector<8x128xf32>
      tpu.vector_store %arg6[%c0_17, %c0_18], %23 {strides = array<i32>} : memref<8x128xf32, #tpu.memory_space<vmem>>, vector<8x128xf32>,
    } else {
    }
    return
  }
  func.func @transform_0(%arg0: i32, %arg1: i32, %arg2: i32) -> (i32, i32) {
    %c0_i32 = arith.constant 0 : i32
    return %arg0, %arg2 : i32, i32
  }
  func.func @transform_1(%arg0: i32, %arg1: i32, %arg2: i32) -> (i32, i32) {
    %c0_i32 = arith.constant 0 : i32
    return %arg2, %arg1 : i32, i32
  }
  func.func @transform_2(%arg0: i32, %arg1: i32, %arg2: i32) -> (i32, i32) {
    %c0_i32 = arith.constant 0 : i32
    %c0_i32_0 = arith.constant 0 : i32
    return %c0_i32, %arg1 : i32, i32
  }
  func.func @transform_3(%arg0: i32, %arg1: i32, %arg2: i32) -> (i32, i32) {
    %c0_i32 = arith.constant 0 : i32
    return %arg0, %arg1 : i32, i32
  }
}

</mosaic_0001>

<bundles_post_ra>
// kernel: tpu_custom_call.1
= control target key start
LH: loop header
LB: loop body
LE: loop exit
PB: predicated region body
PF: predicated region fallthrough
CT: control target
= control target key end

     0   :  { %8 = vsyncpa [#allocation3], 0  ;;  %s980_s0 = inlined_call_operand.hbm [shape: f32[16,128], index: 0, kind: input, shape index: {}]   ;;  %s981_s1 = inlined_call_operand.hbm [shape: f32[128,128], index: 1, kind: input, shape index: {}]   ;;  %s982_s2 = inlined_call_operand.vmem [shape: f32[1,128], index: 2, kind: input, shape index: {}]   ;;  %s983_s3 = inlined_call_operand.hbm [shape: f32[16,128], index: 3, kind: output, shape index: {}]  }
   0x1   :  { %10 = vsyncpa [#allocation3 + $0x1], 0 }
   0x2   :  { %11 = vsyncpa [#allocation6], 0 }
   0x3   :  { %12 = vsyncpa [#allocation4], 0 }
   0x4   :  { %14 = vsyncpa [#allocation4 + $0x1], 0  ;;  %s803_s12 = smov 0   ;;  %s805_s13 = smov 0  }
   0x5   :  { %s807_s14 = smov 0   ;;  %s809_s15 = smov 0  }
   0x6   :  { %s811_s16 = smov 0   ;;  %s813_s17 = smov 0  }
   0x7 LB: > { %s488_s18 = sadd.s32 4294967295, %s774_s17   ;;  %s489_s19 = sadd.s32 4294967294, %s774_s17   ;;  %s774_s17 = sphi %s813_s17, %s20_s17   ;;  %s770_s16 = sphi %s811_s16, %s1001_s16   ;;  %s766_s15 = sphi %s809_s15, %s1000_s15   ;;  %s762_s14 = sphi %s807_s14, %s999_s14   ;;  %s758_s13 = sphi %s805_s13, %s998_s13   ;;  %s754_s12 = sphi %s803_s12, %s997_s12  }
   0x8   : > { %p61_p0 = scmp.ne.s32.totalorder %s758_s13, %s754_s12  ;;  %p837_p1 = scmp.eq.s32.totalorder %s488_s18, 0 }
   0x9   : > { %p841_p2 = scmp.eq.s32.totalorder %s488_s18, 1  ;;  %p147_p3 = scmp.eq.s32.totalorder %s489_s19, 1 }
   0xa   : > { %p847_p4 = por %p837_p1, %p61_p0  ;;  %p490_p5 = scmp.ge.s32.totalorder %s774_s17, 1 }
   0xb   : > { %p852_p6 = por %p147_p3, %p61_p0  ;;  %p154_p7 = scmp.lt.s32.totalorder %s774_s17, 3 }
   0xc   : > { %s987_s22 = scalar_select %p847_p4, 1, 0 }
   0xd   : > { %s988_s23 = scalar_select %p852_p6, 1, 0 }
   0xe   : > { %p857_p8 = pnand %p490_p5, %p154_p7  ;;  %s776_s25 = smov [#allocation5]  }
   0xf   : > { %s170_s26 = sshll.u32 %s776_s25, 4  ;;  %s39_s28 = sadd.s32 1, %s770_s16  ;;  %s171_s26 = int_to_ptr.vmem [resolvable:$true] %s170_s26 }
  0x10   : > { %p565_p9 = pneg %p857_p8  ;;  %s647_s29 = scalar_lea.vmem %s171_s26, 2048 }
  0x11   : > { %p648_p13 = scmp.ne.s32.totalorder %s171_s26, %s647_s29  ;;  %p655_p5 = scmp.lt.s32.totalorder %s171_s26, %s171_s26 }
  0x12   : > { %p866_p11 = pnand %p565_p9, %p837_p1  ;;  %p656_p7 = scmp.lt.s32.totalorder %s647_s29, %s647_s29 }
  0x14   : > { %p638_p12 = pneg %p866_p11  ;;  %p657_p6 = por %p656_p7, %p655_p5 }
  0x16   : > { %p650_p0 = pnand %p648_p13, %p638_p12 }
  0x18   : > { %p651_p3 = pneg %p650_p0 }
  0x1a   : > { %p658_p4 = pnand %p657_p6, %p651_p3 }
  0x1c   : > { %661 = shalt.err (!%p658_p4)
}
  0x1d   : > { %s777_s30 = smov 128   ;;  %s778_s4 = smov 8  }
  0x1e   : > { %568 = dma.hbm_to_vmem [thread:$0]  (!%p866_p11), %s981_s1, 2048, %s171_s26, [#allocation6], %s777_s30, %s777_s30, %s778_s4  }
  0x1f   : > { %p41_p6 = scmp.ge.s32.totalorder %s39_s28, 2  ;;  %s48_s7 = sadd.s32 1, %s762_s14 }
  0x20   : > { %p55_p4 = scmp.ne.s32.totalorder %s762_s14, %s758_s13  ;;  %p56_p9 = scmp.eq.s32.totalorder %s774_s17, 0 }
  0x21   : > { %s1003_s28 = smov (%p41_p6, %s39_s28), 0  ;;  %p578_p0 = scmp.lt.s32.totalorder %s774_s17, 2 }
  0x22   : > { %p884_p12 = por %p56_p9, %p55_p4  ;;  %p890_p13 = por %p841_p2, %p55_p4 }
  0x23   : > { %s43_s10 = ssub.s32 %s770_s16, %s1003_s28  ;;  %s190_s11 = sand.u32 1, %s762_s14  }
  0x24   : > { %p46_p11 = scmp.eq.s32.totalorder %s43_s10, 0  ;;  %s494_s18 = sshll.u32 %s190_s11, 3 }
  0x25   : > { %s495_s25 = sshll.u32 %s770_s16, 7  ;;  %s194_s30 = scalar_lea.vmem [#allocation2], %s494_s18 }
  0x26   : > { %s899_s19 = scalar_select %p46_p11, %s762_s14, %s48_s7  }
  0x27   : > { %s200_s29 = scalar_lea.hbm %s980_s0, %s495_s25  ;;  %s202_s4 = sshll.u32 %s194_s30, 4  ;;  %s203_s4 = int_to_ptr.vmem [resolvable:$true] %s202_s4 }
  0x28   : > { %p907_p2 = pnand %p578_p0, %p884_p12  ;;  %s191_s5 = scalar_lea.sflag [#allocation3], %s190_s11 }
  0x29   : > { %s675_s6 = scalar_lea.vmem %s203_s4, 128  ;;  %s779_s7 = smov [#allocation2]  }
  0x2a   : > { %p664_p3 = pneg %p907_p2  ;;  %p676_p5 = scmp.ne.s32.totalorder %s203_s4, %s675_s6 }
  0x2b   : > { %s680_s10 = sshll.u32 %s779_s7, 4  ;;  %s681_s10 = int_to_ptr.vmem [resolvable:$false] %s680_s10 }
  0x2c   : > { %p678_p7 = pnand %p676_p5, %p664_p3  ;;  %s682_s25 = scalar_lea.vmem %s681_s10, 256 }
  0x2d   : > { %p683_p4 = scmp.lt.s32.totalorder %s203_s4, %s681_s10  ;;  %p684_p9 = scmp.lt.s32.totalorder %s682_s25, %s675_s6 }
  0x2e   : > { %p679_p6 = pneg %p678_p7 }
  0x2f   : > { %p685_p11 = por %p684_p9, %p683_p4 }
  0x31   : > { %p686_p10 = pnand %p685_p11, %p679_p6 }
  0x33   : > { %689 = shalt.err (!%p686_p10)
}
  0x34   : > { %572 = dma.hbm_to_vmem [thread:$0]  (!%p907_p2), %s200_s29, 128, %s203_s4, %s191_s5  }
  0x35   : > { %211 = sbr.rel (%p857_p8) target bundleno = 322 (0x142), region = 32  ;;  %s918_s8 = sand.u32 (!%p857_p8), 1, %s758_s13  }
  0x36   : > { %s497_s11 = sshll.u32 (!%p857_p8), %s918_s8, 3  ;;  %s214_s18 = scalar_lea.sflag (!%p857_p8), [#allocation3], %s918_s8 }
  0x37   : > { %s924_s26 = scalar_lea.vmem (!%p857_p8), [#allocation2], %s497_s11  ;;  %p994_p12 = scmp.ne.s32.totalorder (!%p857_p8), %s987_s22, 0 }
  0x3a   : > { %741 = dma.done.wait (%p994_p12), %s214_s18, 128  }
  0x3b   : > { %743 = vsyncadd (%p994_p12), %s214_s18, 4294967168 }
  0x3c   : > { %745 = dma.done.wait (%p837_p1), [#allocation6], 2048  }
  0x3d   : > { %747 = vsyncadd (%p837_p1), [#allocation6], 4294965248  ;;  %v780_v0 = vmov 0.0   ;;  %vm781_vm0 = vmmov 0   ;;  %v273_v1 = vld [vmem:[#allocation5 + $0x78] sm:$0xff]  ;;  %v272_v2 = vld [vmem:[#allocation5 + $0x70] sm:$0xff] }
  0x3e   : > { %522 = vmatprep.subr.mxu0 %v780_v0  ;;  %554 = vmatprep.mubr.msk.f32.mxu0 %vm781_vm0, %v780_v0  ;;  %v271_v3 = vld [vmem:[#allocation5 + $0x68] sm:$0xff]  ;;  %v270_v4 = vld [vmem:[#allocation5 + $0x60] sm:$0xff]  ;;  %v269_v5 = vld [vmem:[#allocation5 + $0x58] sm:$0xff]  ;;  %s502_s24 = sshll.u32 %s766_s15, 7  ;;  %s246_s27 = scalar_lea.vmem [#allocation7], %s497_s11 }
  0x3f   : > { %523 = vmatpush3.msra.mxu0 %v273_v1  ;;  %v268_v6 = vld [vmem:[#allocation5 + $0x50] sm:$0xff]  ;;  %v267_v7 = vld [vmem:[#allocation5 + $0x48] sm:$0xff]  ;;  %v266_v8 = vld [vmem:[#allocation5 + $0x40] sm:$0xff]  ;;  %s379_s29 = sshll.u32 %s246_s27, 4  ;;  %s377_s21 = scalar_lea.hbm %s983_s3, %s502_s24  ;;  %s380_s29 = int_to_ptr.vmem [resolvable:$true] %s379_s29 }
  0x40   : > { %524 = vmatprep.subr.mxu0 %v780_v0  ;;  %v265_v9 = vld [vmem:[#allocation5 + $0x38] sm:$0xff]  ;;  %v264_v10 = vld [vmem:[#allocation5 + $0x30] sm:$0xff]  ;;  %v263_v11 = vld [vmem:[#allocation5 + $0x28] sm:$0xff]  ;;  %s365_s5 = scalar_lea.sflag [#allocation4], %s918_s8  ;;  %s690_s6 = scalar_lea.vmem %s380_s29, 128 }
  0x41   : > { %525 = vmatpush3.msra.mxu0 %v272_v2  ;;  %v262_v12 = vld [vmem:[#allocation5 + $0x20] sm:$0xff]  ;;  %v261_v13 = vld [vmem:[#allocation5 + $0x18] sm:$0xff]  ;;  %v260_v14 = vld [vmem:[#allocation5 + $0x10] sm:$0xff]  ;;  %p691_p1 = scmp.ne.s32.totalorder %s380_s29, %s690_s6  ;;  %s782_s7 = smov [#allocation7]  }
  0x42   : > { %526 = vmatprep.subr.mxu0 %v780_v0  ;;  %v259_v15 = vld [vmem:[#allocation5 + $0x8] sm:$0xff]  ;;  %v258_v16 = vld [vmem:[#allocation5] sm:$0xff]  ;;  %v257_v17 = vld [vmem:[%s924_s26] sm:$0xff]  ;;  %s694_s15 = sshll.u32 %s782_s7, 4  ;;  %s695_s15 = int_to_ptr.vmem [resolvable:$false] %s694_s15 }
  0x43   : > { %527 = vmatpush3.msra.mxu0 %v271_v3  ;;  %v500_v19 = vld [vmem:[%s982_s2] ss:$0 sm:$0xff]  ;;  %p692_p8 = pnand %p691_p1, %p890_p13  ;;  %s696_s10 = scalar_lea.vmem %s695_s15, 256 }
  0x44   : > { %528 = vmatprep.subr.mxu0 %v780_v0  ;;  %p697_p0 = scmp.lt.s32.totalorder %s380_s29, %s695_s15  ;;  %p698_p2 = scmp.lt.s32.totalorder %s696_s10, %s690_s6 }
  0x45   : > { %529 = vmatpush3.msra.mxu0 %v270_v4  ;;  %p693_p10 = pneg %p692_p8 }
  0x46   : > { %530 = vmatprep.subr.mxu0 %v780_v0  ;;  %p699_p3 = por %p698_p2, %p697_p0 }
  0x47   : > { %531 = vmatpush3.msra.mxu0 %v269_v5 }
  0x48   : > { %532 = vmatprep.subr.mxu0 %v780_v0  ;;  %p700_p5 = pnand %p699_p3, %p693_p10 }
  0x49   : > { %533 = vmatpush3.msra.mxu0 %v268_v6 }
  0x4a   : > { %534 = vmatprep.subr.mxu0 %v780_v0 }
  0x4b   : > { %535 = vmatpush3.msra.mxu0 %v267_v7 }
  0x4c   : > { %536 = vmatprep.subr.mxu0 %v780_v0 }
  0x4d   : > { %537 = vmatpush3.msra.mxu0 %v266_v8 }
  0x4e   : > { %538 = vmatprep.subr.mxu0 %v780_v0 }
  0x4f   : > { %539 = vmatpush3.msra.mxu0 %v265_v9 }
  0x50   : > { %540 = vmatprep.subr.mxu0 %v780_v0 }
  0x51   : > { %541 = vmatpush3.msra.mxu0 %v264_v10 }
  0x52   : > { %542 = vmatprep.subr.mxu0 %v780_v0 }
  0x53   : > { %543 = vmatpush3.msra.mxu0 %v263_v11 }
  0x54   : > { %544 = vmatprep.subr.mxu0 %v780_v0 }
  0x55   : > { %545 = vmatpush3.msra.mxu0 %v262_v12 }
  0x56   : > { %546 = vmatprep.subr.mxu0 %v780_v0 }
  0x57   : > { %547 = vmatpush3.msra.mxu0 %v261_v13 }
  0x58   : > { %548 = vmatprep.subr.mxu0 %v780_v0 }
  0x59   : > { %549 = vmatpush3.msra.mxu0 %v260_v14 }
  0x5a   : > { %550 = vmatprep.subr.mxu0 %v780_v0 }
  0x5b   : > { %551 = vmatpush3.msra.mxu0 %v259_v15 }
  0x5c   : > { %552 = vmatprep.subr.mxu0 %v780_v0 }
  0x5d   : > { %553 = vmatpush3.msra.mxu0 %v258_v16 }
  0x5e   : > { %555 = vmatmul.mubr.f32.vlgmr.msra.gmra.mxu0 %v257_v17 }
 0x11e   : > { %v340_v18 = vpop.f32.mrf.mxu0 }
 0x11f   : > { %v357_v21 = vadd.f32 %v500_v19, %v340_v18 }
 0x120   : > { %v556_v20 = vpop.f32.mrf.mxu0 }
 0x121   : > { %v359_v22 = vmul.f32 0.70710677, %v357_v21  ;;  %v358_v24 = vmul.f32 0.5, %v357_v21 }
 0x123   : > { %634 = verf.f32 %v359_v22 }
 0x130   : > { %v635_v23 = vpop.eup %634 }
 0x131   : > { %v361_v25 = vadd.f32 1.0, %v635_v23 }
 0x133   : > { %v362_v26 = vmul.f32 %v361_v25, %v358_v24 }
 0x135   : > { %363 = vst [vmem:[%s246_s27] sm:$0xff] %v362_v26 }
 0x136   : > { %703 = shalt.err (!%p700_p5)
}
 0x137   : > { %s704_s25 = scalar_lea.hbm %s377_s21, 128  ;;  %s708_s18 = scalar_lea.hbm %s983_s3, 256 }
 0x138   : > { %p705_p7 = scmp.ne.s32.totalorder %s377_s21, %s704_s25  ;;  %p709_p9 = scmp.lt.s32.totalorder %s377_s21, %s983_s3 }
 0x139   : > { %p710_p11 = scmp.lt.s32.totalorder %s708_s18, %s704_s25 }
 0x13a   : > { %p706_p6 = pnand %p705_p7, %p890_p13 }
 0x13b   : > { %p711_p12 = por %p710_p11, %p709_p9 }
 0x13c   : > { %p707_p4 = pneg %p706_p6 }
 0x13e   : > { %p712_p1 = pnand %p711_p12, %p707_p4 }
 0x140   : > { %715 = shalt.err (!%p712_p1)
}
 0x141   : > { %563 = dma.vmem_to_hbm [thread:$0]  (%p890_p13), %s380_s29, 128, %s377_s21, %s365_s5  }
 0x142 PF: > { %s391_s22 = sand.u32 1, %s754_s12   ;;  %p995_p8 = scmp.ne.s32.totalorder %s988_s23, 0 }
 0x143   : > { %p996_p10 = scmp.ge.s32.totalorder %s774_s17, 2  ;;  %s392_s24 = scalar_lea.sflag [#allocation4], %s391_s22 }
 0x145   : > { %p574_p0 = pnand %p996_p10, %p995_p8 }
 0x147   : > { %p575_p2 = pneg %p574_p0 }
 0x149   : > { %749 = dma.done.wait (%p575_p2), %s392_s24, 128  }
 0x14a   : > { %751 = vsyncadd (%p575_p2), %s392_s24, 4294967168  ;;  %s20_s17 = sadd.s32 1, %s774_s17   ;;  %s997_s12 = smov %s758_s13 }
 0x14b   : > { %p17_p3 = scmp.ge.s32.totalorder %s20_s17, 4   ;;  %s998_s13 = smov %s762_s14 }
 0x14c   : > { %s999_s14 = smov %s899_s19  ;;  %s1000_s15 = smov %s770_s16 }
 0x14d   : > { %s1001_s16 = smov %s1003_s28  ;;  %19 = sbr.rel (!%p17_p3) target bundleno = 7 (0x7), region = 93 }
 0x152   :  { %397 = vsyncpa [#allocation3], 1 }
 0x153   :  { %399 = vsyncpa [#allocation3 + $0x1], 1 }
 0x154   :  { %400 = vsyncpa [#allocation6], 1 }
 0x155   :  { %401 = vsyncpa [#allocation4], 1 }
 0x156   :  { %403 = vsyncpa [#allocation4 + $0x1], 1 }

</bundles_post_ra>
